<compile_context>
chip_gen: v6e
topology: v6e:2x2x1
jax: 0.10.0
libtpu: 0.0.40
codegen_flags: <defaults>
</compile_context>

<pallas_src>
import functools

import jax
import jax.numpy as jnp
from jax import lax
from jax.experimental import pallas as pl
from jax.experimental.pallas import tpu as pltpu


def mlp_kernel(x_ref,
               w1_ref, b1_ref,
               w2_ref, b2_ref,
               w3_ref, b3_ref,
               w4_ref, b4_ref,
               o_ref):
    # x_ref: (TILE_B, F_PAD) bf16.  w*_ref: (out, in) bf16.  b*_ref: (out, 1) f32.
    x = x_ref[...]

    # Layer 1: contract (128, F_PAD) with (TILE_B, F_PAD) over the feature axis
    # -> (128, TILE_B) f32, batch on lanes.
    h = lax.dot_general(w1_ref[...], x,
                        dimension_numbers=(((1,), (1,)), ((), ())),
                        preferred_element_type=jnp.float32)
    h = jnp.maximum(h + b1_ref[...], 0.0)

    # Layer 2: (32, 128) @ (128, TILE_B) -> (32, TILE_B)
    h = jnp.dot(w2_ref[...], h.astype(jnp.bfloat16),
                preferred_element_type=jnp.float32)
    h = jnp.maximum(h + b2_ref[...], 0.0)

    # Layer 3: (16, 32) @ (32, TILE_B) -> (16, TILE_B)
    h = jnp.dot(w3_ref[...], h.astype(jnp.bfloat16),
                preferred_element_type=jnp.float32)
    h = jnp.maximum(h + b3_ref[...], 0.0)

    # Layer 4 (logits, no activation): (NC, 16) @ (16, TILE_B) -> (NC, TILE_B)
    h = jnp.dot(w4_ref[...], h.astype(jnp.bfloat16),
                preferred_element_type=jnp.float32)
    o_ref[...] = (h + b4_ref[...]).astype(o_ref.dtype)   # lane-dense store


@functools.partial(jax.jit, static_argnames=("tile_b",))
def classification_model_forward(x, params, *, tile_b=512):
    """x: (B, input_size) float32.  params: PyTorch-convention dict
    (w_i: (out, in) float32, b_i: (out,) float32).  Returns (B, num_classes) f32."""
    B, F = x.shape
    NC = params["w4"].shape[0]

    # --- wrapper-side layout plumbing (one fused XLA pass over x) -------------
    f_pad = ((F + 63) // 64) * 64                    # align the contraction dim
    b_pad = ((B + tile_b - 1) // tile_b) * tile_b    # batch -> tile multiple
    x_p = jnp.pad(x, ((0, b_pad - B), (0, f_pad - F))).astype(jnp.bfloat16)

    w1 = jnp.pad(params["w1"], ((0, 0), (0, f_pad - F))).astype(jnp.bfloat16)
    w2 = params["w2"].astype(jnp.bfloat16)
    w3 = params["w3"].astype(jnp.bfloat16)
    w4 = params["w4"].astype(jnp.bfloat16)
    b1 = params["b1"].reshape(-1, 1).astype(jnp.float32)
    b2 = params["b2"].reshape(-1, 1).astype(jnp.float32)
    b3 = params["b3"].reshape(-1, 1).astype(jnp.float32)
    b4 = params["b4"].reshape(-1, 1).astype(jnp.float32)

    grid = (b_pad // tile_b,)

    def resident(shape):   # whole array, constant block index -> stays in VMEM
        return pl.BlockSpec(shape, lambda i: (0, 0))

    in_specs = [
        pl.BlockSpec((tile_b, f_pad), lambda i: (i, 0)),   # streamed x tiles
        resident(w1.shape), resident(b1.shape),
        resident(w2.shape), resident(b2.shape),
        resident(w3.shape), resident(b3.shape),
        resident(w4.shape), resident(b4.shape),
    ]
    out_specs = pl.BlockSpec((NC, tile_b), lambda i: (0, i))

    flops = 2 * b_pad * (f_pad * 128 + 128 * 32 + 32 * 16 + 16 * NC)
    bytes_accessed = (
        x_p.size * 2
        + sum(w.size * 2 for w in (w1, w2, w3, w4))
        + sum(b.size * 4 for b in (b1, b2, b3, b4))
        + NC * b_pad * 4
    )

    out_t = pl.pallas_call(
        mlp_kernel,
        out_shape=jax.ShapeDtypeStruct((NC, b_pad), jnp.float32),
        grid=grid,
        in_specs=in_specs,
        out_specs=out_specs,
        compiler_params=pltpu.CompilerParams(
            dimension_semantics=("parallel",),
            vmem_limit_bytes=32 * 1024 * 1024,
        ),
        cost_estimate=pl.CostEstimate(
            flops=flops, transcendentals=0, bytes_accessed=bytes_accessed),
    )(x_p, w1, b1, w2, b2, w3, b3, w4, b4)

    # (NC, b_pad) -> (B, NC): tiny XLA transpose + slice of the small logits slab
    return out_t.T[:B]


def init_params(key, input_size=61, num_classes=4):
    """PyTorch nn.Linear-style init: weight (out, in), bias (out,), U(+-1/sqrt(fan_in))."""
    dims = [(input_size, 128), (128, 32), (32, 16), (16, num_classes)]
    params = {}
    for i, (fan_in, fan_out) in enumerate(dims, start=1):
        key, kw, kb = jax.random.split(key, 3)
        bound = 1.0 / (fan_in ** 0.5)
        params[f"w{i}"] = jax.random.uniform(
            kw, (fan_out, fan_in), jnp.float32, -bound, bound)
        params[f"b{i}"] = jax.random.uniform(
            kb, (fan_out,), jnp.float32, -bound, bound)
    return params


def reference_forward(x, params):
    """Pure-JAX f32 reference matching the PyTorch forward()."""
    h = x
    for i in range(1, 4):
        h = jnp.maximum(h @ params[f"w{i}"].T + params[f"b{i}"], 0.0)
    return h @ params["w4"].T + params["b4"]


if __name__ == "__main__":
    INPUT_SIZE, NUM_CLASSES = 61, 4
    key = jax.random.PRNGKey(0)
    kx, kp = jax.random.split(key)

    B = 300           # non-multiple of the tile: exercises batch padding
    TILE_B = 128      # small test tile; use the 512-2048 default at real batch sizes

    x = jax.random.normal(kx, (B, INPUT_SIZE), dtype=jnp.float32)
    params = init_params(kp, INPUT_SIZE, NUM_CLASSES)

    out = classification_model_forward(x, params, tile_b=TILE_B)
    out = jax.block_until_ready(out)

    ref = reference_forward(x, params)
    assert out.shape == (B, NUM_CLASSES), out.shape
    max_err = jnp.max(jnp.abs(out - ref))
    # bf16 MXU operands with f32 accumulation -> loose tolerance vs. f32 reference
    assert jnp.allclose(out, ref, atol=5e-2, rtol=5e-2), f"mismatch, max_abs_err={max_err}"
    print("KERNEL_OK")
</pallas_src>

<mosaic_0001>
module attributes {stable_mosaic.version = 11 : i64} {
  func.func @mlp_kernel(%arg0: i32, %arg1: memref<128x64xbf16, #tpu.memory_space<vmem>>, %arg2: memref<128x64xbf16, #tpu.memory_space<vmem>>, %arg3: memref<128x1xf32, #tpu.memory_space<vmem>>, %arg4: memref<32x128xbf16, #tpu.memory_space<vmem>>, %arg5: memref<32x1xf32, #tpu.memory_space<vmem>>, %arg6: memref<16x32xbf16, #tpu.memory_space<vmem>>, %arg7: memref<16x1xf32, #tpu.memory_space<vmem>>, %arg8: memref<4x16xbf16, #tpu.memory_space<vmem>>, %arg9: memref<4x1xf32, #tpu.memory_space<vmem>>, %arg10: memref<4x128xf32, #tpu.memory_space<vmem>>) attributes {dimension_semantics = [#tpu.dimension_semantics<parallel>], iteration_bounds = array<i64: 3>, scalar_prefetch = 0 : i64, scratch_operands = 0 : i64, tpu.core_type = #tpu.core_type<tc>, window_params = [{transform_indices = @transform_0, window_bounds = array<i64: 128, 64>}, {pipeline_mode = #tpu.pipeline_mode<synchronous>, transform_indices = @transform_1, window_bounds = array<i64: 128, 64>}, {pipeline_mode = #tpu.pipeline_mode<synchronous>, transform_indices = @transform_2, window_bounds = array<i64: 128, 1>}, {pipeline_mode = #tpu.pipeline_mode<synchronous>, transform_indices = @transform_3, window_bounds = array<i64: 32, 128>}, {pipeline_mode = #tpu.pipeline_mode<synchronous>, transform_indices = @transform_4, window_bounds = array<i64: 32, 1>}, {pipeline_mode = #tpu.pipeline_mode<synchronous>, transform_indices = @transform_5, window_bounds = array<i64: 16, 32>}, {pipeline_mode = #tpu.pipeline_mode<synchronous>, transform_indices = @transform_6, window_bounds = array<i64: 16, 1>}, {pipeline_mode = #tpu.pipeline_mode<synchronous>, transform_indices = @transform_7, window_bounds = array<i64: 4, 16>}, {pipeline_mode = #tpu.pipeline_mode<synchronous>, transform_indices = @transform_8, window_bounds = array<i64: 4, 1>}, {transform_indices = @transform_9, window_bounds = array<i64: 4, 128>}]} {
    %c0 = arith.constant 0 : index
    %c0_0 = arith.constant 0 : index
    %0 = vector.load %arg1[%c0, %c0_0] : memref<128x64xbf16, #tpu.memory_space<vmem>>, vector<128x64xbf16>
    %c0_1 = arith.constant 0 : index
    %c0_2 = arith.constant 0 : index
    %1 = vector.load %arg2[%c0_1, %c0_2] : memref<128x64xbf16, #tpu.memory_space<vmem>>, vector<128x64xbf16>
    %cst = arith.constant dense<0.000000e+00> : vector<128x128xf32>
    %2 = tpu.matmul %1, %0, %cst {dimension_numbers = #tpu.dot_dimension_numbers<[1], [1], [0], [0], [0, 0, 1, 0], [], []>} : vector<128x64xbf16>, vector<128x64xbf16>, vector<128x128xf32> -> vector<128x128xf32>
    %c0_3 = arith.constant 0 : index
    %c0_4 = arith.constant 0 : index
    %3 = vector.load %arg3[%c0_3, %c0_4] : memref<128x1xf32, #tpu.memory_space<vmem>>, vector<128x1xf32>
    %4 = vector.broadcast %3 : vector<128x1xf32> to vector<128x128xf32>
    %5 = arith.addf %2, %4 : vector<128x128xf32>
    %cst_5 = arith.constant 0.000000e+00 : f32
    %6 = vector.broadcast %cst_5 : f32 to vector<128x128xf32>
    %7 = arith.maximumf %5, %6 : vector<128x128xf32>
    %c0_6 = arith.constant 0 : index
    %c0_7 = arith.constant 0 : index
    %8 = vector.load %arg4[%c0_6, %c0_7] : memref<32x128xbf16, #tpu.memory_space<vmem>>, vector<32x128xbf16>
    %9 = arith.truncf %7 : vector<128x128xf32> to vector<128x128xbf16>
    %cst_8 = arith.constant dense<0.000000e+00> : vector<32x128xf32>
    %10 = tpu.matmul %8, %9, %cst_8 {dimension_numbers = #tpu.dot_dimension_numbers<[1], [0], [0], [1], [0, 0, 1, 1], [], []>} : vector<32x128xbf16>, vector<128x128xbf16>, vector<32x128xf32> -> vector<32x128xf32>
    %c0_9 = arith.constant 0 : index
    %c0_10 = arith.constant 0 : index
    %11 = vector.load %arg5[%c0_9, %c0_10] : memref<32x1xf32, #tpu.memory_space<vmem>>, vector<32x1xf32>
    %12 = vector.broadcast %11 : vector<32x1xf32> to vector<32x128xf32>
    %13 = arith.addf %10, %12 : vector<32x128xf32>
    %cst_11 = arith.constant 0.000000e+00 : f32
    %14 = vector.broadcast %cst_11 : f32 to vector<32x128xf32>
    %15 = arith.maximumf %13, %14 : vector<32x128xf32>
    %c0_12 = arith.constant 0 : index
    %c0_13 = arith.constant 0 : index
    %16 = vector.load %arg6[%c0_12, %c0_13] : memref<16x32xbf16, #tpu.memory_space<vmem>>, vector<16x32xbf16>
    %17 = arith.truncf %15 : vector<32x128xf32> to vector<32x128xbf16>
    %cst_14 = arith.constant dense<0.000000e+00> : vector<16x128xf32>
    %18 = tpu.matmul %16, %17, %cst_14 {dimension_numbers = #tpu.dot_dimension_numbers<[1], [0], [0], [1], [0, 0, 1, 1], [], []>} : vector<16x32xbf16>, vector<32x128xbf16>, vector<16x128xf32> -> vector<16x128xf32>
    %c0_15 = arith.constant 0 : index
    %c0_16 = arith.constant 0 : index
    %19 = vector.load %arg7[%c0_15, %c0_16] : memref<16x1xf32, #tpu.memory_space<vmem>>, vector<16x1xf32>
    %20 = vector.broadcast %19 : vector<16x1xf32> to vector<16x128xf32>
    %21 = arith.addf %18, %20 : vector<16x128xf32>
    %cst_17 = arith.constant 0.000000e+00 : f32
    %22 = vector.broadcast %cst_17 : f32 to vector<16x128xf32>
    %23 = arith.maximumf %21, %22 : vector<16x128xf32>
    %c0_18 = arith.constant 0 : index
    %c0_19 = arith.constant 0 : index
    %24 = vector.load %arg8[%c0_18, %c0_19] : memref<4x16xbf16, #tpu.memory_space<vmem>>, vector<4x16xbf16>
    %25 = arith.truncf %23 : vector<16x128xf32> to vector<16x128xbf16>
    %cst_20 = arith.constant dense<0.000000e+00> : vector<4x128xf32>
    %26 = tpu.matmul %24, %25, %cst_20 {dimension_numbers = #tpu.dot_dimension_numbers<[1], [0], [0], [1], [0, 0, 1, 1], [], []>} : vector<4x16xbf16>, vector<16x128xbf16>, vector<4x128xf32> -> vector<4x128xf32>
    %c0_21 = arith.constant 0 : index
    %c0_22 = arith.constant 0 : index
    %27 = vector.load %arg9[%c0_21, %c0_22] : memref<4x1xf32, #tpu.memory_space<vmem>>, vector<4x1xf32>
    %28 = vector.broadcast %27 : vector<4x1xf32> to vector<4x128xf32>
    %29 = arith.addf %26, %28 : vector<4x128xf32>
    %c0_23 = arith.constant 0 : index
    %c0_24 = arith.constant 0 : index
    %30 = vector.load %arg10[%c0_23, %c0_24] : memref<4x128xf32, #tpu.memory_space<vmem>>, vector<4x128xf32>
    tpu.vector_store %arg10[%c0_23, %c0_24], %29 {strides = array<i32>} : memref<4x128xf32, #tpu.memory_space<vmem>>, vector<4x128xf32>,
    return
  }
  func.func @transform_0(%arg0: i32) -> (i32, i32) {
    %c0_i32 = arith.constant 0 : i32
    %c0_i32_0 = arith.constant 0 : i32
    return %arg0, %c0_i32 : i32, i32
  }
  func.func @transform_1(%arg0: i32) -> (i32, i32) {
    %c0_i32 = arith.constant 0 : i32
    %c0_i32_0 = arith.constant 0 : i32
    %c0_i32_1 = arith.constant 0 : i32
    return %c0_i32, %c0_i32_0 : i32, i32
  }
  func.func @transform_2(%arg0: i32) -> (i32, i32) {
    %c0_i32 = arith.constant 0 : i32
    %c0_i32_0 = arith.constant 0 : i32
    %c0_i32_1 = arith.constant 0 : i32
    return %c0_i32, %c0_i32_0 : i32, i32
  }
  func.func @transform_3(%arg0: i32) -> (i32, i32) {
    %c0_i32 = arith.constant 0 : i32
    %c0_i32_0 = arith.constant 0 : i32
    %c0_i32_1 = arith.constant 0 : i32
    return %c0_i32, %c0_i32_0 : i32, i32
  }
  func.func @transform_4(%arg0: i32) -> (i32, i32) {
    %c0_i32 = arith.constant 0 : i32
    %c0_i32_0 = arith.constant 0 : i32
    %c0_i32_1 = arith.constant 0 : i32
    return %c0_i32, %c0_i32_0 : i32, i32
  }
  func.func @transform_5(%arg0: i32) -> (i32, i32) {
    %c0_i32 = arith.constant 0 : i32
    %c0_i32_0 = arith.constant 0 : i32
    %c0_i32_1 = arith.constant 0 : i32
    return %c0_i32, %c0_i32_0 : i32, i32
  }
  func.func @transform_6(%arg0: i32) -> (i32, i32) {
    %c0_i32 = arith.constant 0 : i32
    %c0_i32_0 = arith.constant 0 : i32
    %c0_i32_1 = arith.constant 0 : i32
    return %c0_i32, %c0_i32_0 : i32, i32
  }
  func.func @transform_7(%arg0: i32) -> (i32, i32) {
    %c0_i32 = arith.constant 0 : i32
    %c0_i32_0 = arith.constant 0 : i32
    %c0_i32_1 = arith.constant 0 : i32
    return %c0_i32, %c0_i32_0 : i32, i32
  }
  func.func @transform_8(%arg0: i32) -> (i32, i32) {
    %c0_i32 = arith.constant 0 : i32
    %c0_i32_0 = arith.constant 0 : i32
    %c0_i32_1 = arith.constant 0 : i32
    return %c0_i32, %c0_i32_0 : i32, i32
  }
  func.func @transform_9(%arg0: i32) -> (i32, i32) {
    %c0_i32 = arith.constant 0 : i32
    %c0_i32_0 = arith.constant 0 : i32
    return %c0_i32, %arg0 : i32, i32
  }
}

</mosaic_0001>

<bundles_post_ra>
// kernel: classification_model_forward.1
= control target key start
LH: loop header
LB: loop body
LE: loop exit
PB: predicated region body
PF: predicated region fallthrough
CT: control target
= control target key end

     0   :  { %14 = vsyncpa [#allocation3], 0  ;;  %s1571_s0 = inlined_call_operand.vmem [shape: bf16[384,64], index: 0, kind: input, shape index: {}]   ;;  %s1572_s1 = inlined_call_operand.vmem [shape: bf16[128,64], index: 1, kind: input, shape index: {}]   ;;  %s1573_s2 = inlined_call_operand.vmem [shape: f32[128,1], index: 2, kind: input, shape index: {}]   ;;  %s1574_s3 = inlined_call_operand.vmem [shape: bf16[32,128], index: 3, kind: input, shape index: {}]   ;;  %s1575_s4 = inlined_call_operand.vmem [shape: f32[32,1], index: 4, kind: input, shape index: {}]   ;;  %s1576_s5 = inlined_call_operand.vmem [shape: bf16[16,32], index: 5, kind: input, shape index: {}]   ;;  %s1577_s6 = inlined_call_operand.vmem [shape: f32[16,1], index: 6, kind: input, shape index: {}]   ;;  %s1578_s7 = inlined_call_operand.vmem [shape: bf16[4,16], index: 7, kind: input, shape index: {}]   ;;  %s1579_s8 = inlined_call_operand.vmem [shape: f32[4,1], index: 8, kind: input, shape index: {}]   ;;  %s1580_s9 = inlined_call_operand.hbm [shape: f32[4,384], index: 9, kind: output, shape index: {}]  }
   0x1   :  { %16 = vsyncpa [#allocation3 + $0x1], 0  ;;  %s1323_s30 = smov 0   ;;  %s1325_s10 = smov 0  }
   0x2   :  { %s1327_s11 = smov 0   ;;  %s1329_s12 = smov 0  }
   0x3 LB: > { %s1344_s13 = sadd.s32 4294967295, %s1267_s12   ;;  %s999_s14 = sadd.s32 4294967294, %s1267_s12   ;;  %s1267_s12 = sphi %s1329_s12, %s1586_s12   ;;  %s1263_s11 = sphi %s1327_s11, %s1585_s11   ;;  %s1259_s10 = sphi %s1325_s10, %s1584_s10   ;;  %s1255_s30 = sphi %s1323_s30, %s1583_s30  }
   0x4   : > { %s1348_s15 = sadd.s32 1, %s1267_s12   ;;  %s223_s16 = sadd.s32 1, %s1263_s11 }
   0x5   : > { %s220_s17 = ssub.s32 %s1267_s12, %s1348_s15  ;;  %p233_p0 = scmp.ne.s32.totalorder %s1263_s11, %s1259_s10 }
   0x6   : > { %p221_p1 = scmp.eq.s32.totalorder %s220_s17, 0  ;;  %p234_p2 = scmp.eq.s32.totalorder %s1344_s13, 2 }
   0x7   : > { %p239_p3 = scmp.ne.s32.totalorder %s1259_s10, %s1255_s30  ;;  %p240_p4 = scmp.eq.s32.totalorder %s999_s14, 2 }
   0x8   : > { %s1359_s18 = scalar_select %p221_p1, %s1263_s11, %s223_s16  }
   0x9   : > { %p1361_p5 = por %p234_p2, %p233_p0  ;;  %p1365_p6 = por %p240_p4, %p239_p3 }
   0xa   : > { %p1002_p7 = scmp.ge.s32.totalorder %s1267_s12, 1  ;;  %p291_p8 = scmp.lt.s32.totalorder %s1267_s12, 4 }
   0xc   : > { %p292_p9 = pnand %p1002_p7, %p291_p8 }
   0xd   : > { %s1004_s21 = sshll.u32 (!%p292_p9), %s1344_s13, 4  ;;  %s324_s28 = sand.u32 (!%p292_p9), 1, %s1259_s10  }
   0xe   : > { %295 = sbr.rel (%p292_p9) target bundleno = 971 (0x3cb), region = 56  ;;  %p328_p10 = scmp.lt.s32.totalorder (!%p292_p9), %s1004_s21, 47 }
   0xf   : > { %s1003_s29 = sshll.u32 (!%p292_p9), %s324_s28, 2  ;;  %s1036_s14 = sshll.u32 (!%p292_p9), %s1344_s13, 6 }
  0x10   : > { %s326_s16 = scalar_lea.vmem (!%p292_p9), [#allocation2], %s1003_s29  ;;  %s1530_s22 = scalar_lea.hbm (!%p292_p9), %s1580_s9, %s1036_s14 }
  0x11   : > { %s927_s23 = scalar_lea.sflag (!%p292_p9), [#allocation3], %s324_s28 }
  0x13   : > { %v1196_v0 = vld [vmem:[%s1572_s1] sm:$0xff]   ;;  %vm542_vm0 = vcmask 523264   ;;  %s1588_s21 = smov (!%p328_p10, %s1004_s21), 47  ;;  %v1269_v1 = vmov 0   ;;  %v380_v7 = vld [vmem:[%s1573_s2 + $0x70] sm:$0xff]  ;;  %v381_v9 = vld [vmem:[%s1573_s2 + $0x78] sm:$0xff] }
  0x14   : > { %1086 = vmatprep.mubr.msk.bf16.mxu0 %vm542_vm0, %v1196_v0  ;;  %1186 = vset.pattern.permute.xlu0 %v1269_v1  ;;  %s1005_s24 = sshll.u32 %s1588_s21, 2  ;;  %v378_v8 = vld [vmem:[%s1573_s2 + $0x60] sm:$0xff]  ;;  %v379_v10 = vld [vmem:[%s1573_s2 + $0x68] sm:$0xff]  ;;  %v376_v11 = vld [vmem:[%s1573_s2 + $0x50] sm:$0xff]  ;;  %vm1271_vm1 = vmmov 0   ;;  %vm826_vm2 = vcmask 261120  }
  0x15   : > { %1187 = vset.pattern.permute.xlu1 %v1269_v1  ;;  %s1379_s27 = scalar_lea.vmem %s1571_s0, %s1005_s24  ;;  %454 = vperm.xlu0 %1186, %v380_v7   ;;  %v377_v14 = vld [vmem:[%s1573_s2 + $0x58] sm:$0xff]  ;;  %v374_v15 = vld [vmem:[%s1573_s2 + $0x40] sm:$0xff]  ;;  %v375_v16 = vld [vmem:[%s1573_s2 + $0x48] sm:$0xff]  ;;  %vm881_vm3 = vcmask 130048   ;;  %s1272_s24 = smov [#allocation2]  }
  0x16   : > { %v1188_v2 = vld [vmem:[%s1379_s27 + $0x38] sm:$0xff]   ;;  %v1189_v3 = vld [vmem:[%s1379_s27 + $0x30] sm:$0xff]   ;;  %v1190_v6 = vld [vmem:[%s1379_s27 + $0x28] sm:$0xff]   ;;  %444 = vperm.xlu1 %1187, %v378_v8   ;;  %s1211_s25 = sshll.u32 %s1272_s24, 4  ;;  %s1212_s25 = int_to_ptr.vmem [resolvable:$false] %s1211_s25 }
  0x17   : > { %1136 = vmatprep.subr.msk.bf16.mxu0 %vm542_vm0, %v1188_v2  ;;  %v589_v4 = vsel %vm542_vm0, %v1188_v2, 0  ;;  %v586_v5 = vsel %vm542_vm0, %v1189_v3, 0  ;;  %v583_v12 = vsel %vm542_vm0, %v1190_v6, 0  ;;  %v1191_v13 = vld [vmem:[%s1379_s27 + $0x20] sm:$0xff]   ;;  %v372_v17 = vld [vmem:[%s1573_s2 + $0x30] sm:$0xff]  ;;  %v1192_v19 = vld [vmem:[%s1379_s27 + $0x18] sm:$0xff]  }
  0x18   : > { %1071 = vmatpush3.bf16.xpose.msra.mxu0 %v589_v4  ;;  %v580_v18 = vsel %vm542_vm0, %v1191_v13, 0  ;;  %v373_v20 = vld [vmem:[%s1573_s2 + $0x38] sm:$0xff]  ;;  %v370_v21 = vld [vmem:[%s1573_s2 + $0x20] sm:$0xff]  ;;  %v371_v22 = vld [vmem:[%s1573_s2 + $0x28] sm:$0xff]  ;;  %v577_v24 = vsel %vm542_vm0, %v1192_v19, 0  ;;  %s1213_s26 = scalar_lea.vmem %s1212_s25, 128 }
  0x19   : > { %1137 = vmatprep.subr.msk.bf16.mxu0 %vm542_vm0, %v1189_v3  ;;  %459 = vperm.xlu0 %1186, %v381_v9   ;;  %v368_v23 = vld [vmem:[%s1573_s2 + $0x10] sm:$0xff]  ;;  %v369_v26 = vld [vmem:[%s1573_s2 + $0x18] sm:$0xff]  ;;  %v366_v27 = vld [vmem:[%s1573_s2] sm:$0xff] }
  0x1a   : > { %449 = vperm.xlu1 %1187, %v379_v10   ;;  %v1193_v25 = vld [vmem:[%s1379_s27 + $0x10] sm:$0xff]   ;;  %v367_v28 = vld [vmem:[%s1573_s2 + $0x8] sm:$0xff]  ;;  %v719_v32 = vld [vmem:[%s1575_s4 + $0x18] sm:$0xff] }
  0x1b   : > { %v718_v29 = vld [vmem:[%s1575_s4 + $0x10] sm:$0xff]  ;;  %v574_v30 = vsel %vm542_vm0, %v1193_v25, 0  ;;  %v1194_v31 = vld [vmem:[%s1379_s27 + $0x8] sm:$0xff]   ;;  %v716_v33 = vld [vmem:[%s1575_s4] sm:$0xff] }
  0x1c   : > { %v717_v34 = vld [vmem:[%s1575_s4 + $0x8] sm:$0xff]  ;;  %v809_v35 = vld [vmem:[%s1577_s6] sm:$0xff]  ;;  %v571_v36 = vsel %vm542_vm0, %v1194_v31, 0  ;;  %v1198_v42 = vld [vmem:[%s1572_s1 + $0x10] sm:$0xff]  }
  0x1d   : > { %434 = vperm.xlu0 %1186, %v376_v11   ;;  %v1195_v37 = vld [vmem:[%s1379_s27] sm:$0xff]   ;;  %v810_v38 = vld [vmem:[%s1577_s6 + $0x8] sm:$0xff]  ;;  %v1199_v43 = vld [vmem:[%s1572_s1 + $0x18] sm:$0xff]   ;;  %s940_s27 = sshll.u32 %s326_s16, 4  ;;  %s1532_s27 = int_to_ptr.vmem [resolvable:$true] %s940_s27 }
  0x1e   : > { %439 = vperm.xlu1 %1187, %v377_v14   ;;  %v875_v39 = vld [vmem:[%s1579_s8] sm:$0xf]  ;;  %v568_v40 = vsel %vm542_vm0, %v1195_v37, 0  ;;  %v1197_v41 = vld [vmem:[%s1572_s1 + $0x8] sm:$0xff]   ;;  %v1202_v46 = vld [vmem:[%s1572_s1 + $0x30] sm:$0xff]   ;;  %s1207_s13 = scalar_lea.vmem %s1532_s27, 64  ;;  %p1214_p0 = scmp.lt.s32.totalorder %s1532_s27, %s1212_s25 }
  0x1f   : > { %v1200_v44 = vld [vmem:[%s1572_s1 + $0x20] sm:$0xff]   ;;  %v1201_v45 = vld [vmem:[%s1572_s1 + $0x28] sm:$0xff]   ;;  %v1203_v47 = vld [vmem:[%s1572_s1 + $0x38] sm:$0xff]   ;;  %p1208_p11 = scmp.ne.s32.totalorder %s1532_s27, %s1207_s13  ;;  %p1215_p1 = scmp.lt.s32.totalorder %s1213_s26, %s1207_s13 }
  0x20   : > { %1073 = vmatpush3.bf16.xpose.msra.mxu0 %v586_v5  ;;  %v1204_v48 = vld [vmem:[%s1574_s3] sm:$0xff]  }
  0x21   : > { %1138 = vmatprep.subr.msk.bf16.mxu0 %vm542_vm0, %v1190_v6  ;;  %424 = vperm.xlu0 %1186, %v374_v15   ;;  %p1209_p12 = pnand %p1208_p11, %p1361_p5  ;;  %p1216_p2 = por %p1215_p1, %p1214_p0 }
  0x22   : > { %429 = vperm.xlu1 %1187, %v375_v16   ;;  %1118 = vmatprep.mubr.bf16.mxu1 %v1204_v48 }
  0x23   : > { %p1210_p13 = pneg %p1209_p12 }
  0x25   : > { %414 = vperm.xlu0 %1186, %v372_v17   ;;  %p1217_p3 = pnand %p1216_p2, %p1210_p13 }
  0x26   : > { %419 = vperm.xlu1 %1187, %v373_v20  }
  0x28   : > { %1075 = vmatpush3.bf16.xpose.msra.mxu0 %v583_v12 }
  0x29   : > { %1139 = vmatprep.subr.msk.bf16.mxu0 %vm542_vm0, %v1191_v13  ;;  %404 = vperm.xlu0 %1186, %v370_v21  }
  0x2a   : > { %409 = vperm.xlu1 %1187, %v371_v22  }
  0x2d   : > { %394 = vperm.xlu0 %1186, %v368_v23  }
  0x2e   : > { %399 = vperm.xlu1 %1187, %v369_v26  }
  0x30   : > { %1077 = vmatpush3.bf16.xpose.msra.mxu0 %v580_v18 }
  0x31   : > { %1140 = vmatprep.subr.msk.bf16.mxu0 %vm542_vm0, %v1192_v19  ;;  %384 = vperm.xlu0 %1186, %v366_v27  }
  0x32   : > { %389 = vperm.xlu1 %1187, %v367_v28  }
  0x35   : > { %732 = vperm.xlu0 %1186, %v718_v29  }
  0x36   : > { %737 = vperm.xlu1 %1187, %v719_v32  }
  0x38   : > { %1079 = vmatpush3.bf16.xpose.msra.mxu0 %v577_v24 }
  0x39   : > { %1141 = vmatprep.subr.msk.bf16.mxu0 %vm542_vm0, %v1193_v25  ;;  %722 = vperm.xlu0 %1186, %v716_v33  }
  0x3a   : > { %727 = vperm.xlu1 %1187, %v717_v34  }
  0x3d   : > { %813 = vperm.xlu0 %1186, %v809_v35  }
  0x3e   : > { %818 = vperm.xlu1 %1187, %v810_v38  }
  0x40   : > { %1081 = vmatpush3.bf16.xpose.msra.mxu0 %v574_v30 }
  0x41   : > { %1142 = vmatprep.subr.msk.bf16.mxu0 %vm542_vm0, %v1194_v31  ;;  %878 = vperm.xlu0 %1186, %v875_v39  }
  0x48   : > { %1083 = vmatpush3.bf16.xpose.msra.mxu0 %v571_v36 }
  0x49   : > { %1143 = vmatprep.subr.msk.bf16.mxu0 %vm542_vm0, %v1195_v37 }
  0x50   : > { %1085 = vmatpush3.bf16.xpose.msra.mxu0 %v568_v40 }
  0x57   : > { %1087 = vmatmul.mubr.msk.bf16.vlgmr.msra.gmra.mxu0 %vm542_vm0, %v1197_v41 }
  0x58   : > { %1090 = vmatprep.mubr.msk.bf16.mxu0 %vm542_vm0, %v1198_v42 }
  0x5f   : > { %1091 = vmatmul.mubr.msk.bf16.gmra.mxu0 %vm542_vm0, %v1199_v43 }
  0x60   : > { %1094 = vmatprep.mubr.msk.bf16.mxu0 %vm542_vm0, %v1200_v44 }
  0x67   : > { %1095 = vmatmul.mubr.msk.bf16.gmra.mxu0 %vm542_vm0, %v1201_v45 }
  0x68   : > { %1098 = vmatprep.mubr.msk.bf16.mxu0 %vm542_vm0, %v1202_v46 }
  0x6f   : > { %1099 = vmatmul.mubr.msk.bf16.gmra.mxu0 %vm542_vm0, %v1203_v47 }
  0x90   : > { %v455_v54 = vpop.permute.xlu0 %454 }
  0x91   : > { %v445_v52 = vpop.permute.xlu1 %444 }
  0x94   : > { %v460_v59 = vpop.permute.xlu0 %459 }
  0x95   : > { %v450_v57 = vpop.permute.xlu1 %449 }
  0x98   : > { %v435_v0 = vpop.permute.xlu0 %434 }
  0x99   : > { %v440_v62 = vpop.permute.xlu1 %439 }
  0x9c   : > { %v425_v5 = vpop.permute.xlu0 %424 }
  0x9d   : > { %v430_v3 = vpop.permute.xlu1 %429 }
  0xa0   : > { %v415_v17 = vpop.permute.xlu0 %414 }
  0xa1   : > { %v420_v11 = vpop.permute.xlu1 %419 }
  0xa4   : > { %v405_v28 = vpop.permute.xlu0 %404 }
  0xa5   : > { %v410_v25 = vpop.permute.xlu1 %409 }
  0xa8   : > { %v395_v38 = vpop.permute.xlu0 %394 }
  0xa9   : > { %v400_v34 = vpop.permute.xlu1 %399 }
  0xac   : > { %v385_v47 = vpop.permute.xlu0 %384 }
  0xad   : > { %v390_v44 = vpop.permute.xlu1 %389 }
 0x117   : > { %v1505_v49 = vpop.f32.mrf.mxu0 }
 0x118   : > { %v634_v45 = vadd.f32 %v1505_v49, %v395_v38  ;;  %v1205_v49 = vld [vmem:[%s1574_s3 + $0x8] sm:$0xff]  }
 0x119   : > { %v1507_v50 = vpop.f32.mrf.mxu0 }
 0x11b   : > { %v1089_v51 = vpop.f32.mrf.mxu0 }
 0x11c   : > { %v637_v41 = vadd.f32 %v1089_v51, %v400_v34 }
 0x11d   : > { %v1509_v53 = vpop.f32.mrf.mxu0 }
 0x11e   : > { %v691_v48 = vmax.f32 %v637_v41, 0.0 }
 0x11f   : > { %v1092_v55 = vpop.f32.mrf.mxu0 }
 0x120   : > { %v650_v32 = vadd.f32 %v1092_v55, %v415_v17  ;;  %v690_v55 = vmax.f32 %v634_v45, 0.0 }
 0x121   : > { %v641_v56 = vpop.f32.mrf.mxu0 }
 0x122   : > { %v694_v39 = vmax.f32 %v650_v32, 0.0  ;;  %v642_v40 = vadd.f32 %v641_v56, %v405_v28  ;;  %v709_v56 = vpack.c.bf16 %v691_v48, %v690_v55 }
 0x123   : > { %v1093_v58 = vpop.f32.mrf.mxu0 }
 0x124   : > { %v653_v29 = vadd.f32 %v1093_v58, %v420_v11  ;;  %v692_v46 = vmax.f32 %v642_v40, 0.0 }
 0x125   : > { %v644_v60 = vpop.f32.mrf.mxu0 }
 0x126   : > { %v695_v35 = vmax.f32 %v653_v29, 0.0  ;;  %v645_v36 = vadd.f32 %v644_v60, %v410_v25  ;;  %v738_v60 = vpop.permute.xlu1 %737  ;;  %v873_v25 = vld [vmem:[%s1578_s7] sm:$0x3] }
 0x127   : > { %v1096_v61 = vpop.f32.mrf.mxu0 }
 0x128   : > { %v666_v18 = vadd.f32 %v1096_v61, %v435_v0  ;;  %v711_v42 = vpack.c.bf16 %v695_v35, %v694_v39  ;;  %v693_v43 = vmax.f32 %v645_v36, 0.0 }
 0x129   : > { %v657_v63 = vpop.f32.mrf.mxu0 }
 0x12a   : > { %v698_v26 = vmax.f32 %v666_v18, 0.0  ;;  %v658_v27 = vadd.f32 %v657_v63, %v425_v5 }
 0x12b   : > { %v1097_v1 = vpop.f32.mrf.mxu0 }
 0x12c   : > { %v669_v13 = vadd.f32 %v1097_v1, %v440_v62  ;;  %v696_v33 = vmax.f32 %v658_v27, 0.0 }
 0x12d   : > { %v660_v2 = vpop.f32.mrf.mxu0 }
 0x12e   : > { %v699_v22 = vmax.f32 %v669_v13, 0.0  ;;  %v661_v23 = vadd.f32 %v660_v2, %v430_v3  ;;  %v728_v3 = vpop.permute.xlu1 %727  ;;  %v1206_v13 = vld [vmem:[%s1576_s5] sm:$0xff]  }
 0x12f   : > { %v1100_v4 = vpop.f32.mrf.mxu0 }
 0x130   : > { %v682_v7 = vadd.f32 %v1100_v4, %v455_v54  ;;  %v713_v30 = vpack.c.bf16 %v699_v22, %v698_v26  ;;  %v697_v31 = vmax.f32 %v661_v23, 0.0  ;;  %v710_v54 = vpack.c.bf16 %v693_v43, %v692_v46 }
 0x131   : > { %v673_v6 = vpop.f32.mrf.mxu0 }
 0x132   : > { %v674_v9 = vadd.f32 %v673_v6, %v445_v52  ;;  %v702_v14 = vmax.f32 %v682_v7, 0.0  ;;  %v712_v37 = vpack.c.bf16 %v697_v31, %v696_v33  ;;  %v629_v52 = vadd.f32 %v1509_v53, %v390_v44  ;;  %v819_v18 = vpop.permute.xlu1 %818 }
 0x133   : > { %v1101_v8 = vpop.f32.mrf.mxu0  ;;  %v1270_v53 = vmov 0.0  }
 0x134   : > { %v685_v10 = vadd.f32 %v1101_v8, %v460_v59  ;;  %v700_v19 = vmax.f32 %v674_v9, 0.0  ;;  %v689_v51 = vmax.f32 %v629_v52, 0.0 }
 0x135   : > { %v676_v12 = vpop.f32.mrf.mxu0 }
 0x136   : > { %v703_v15 = vmax.f32 %v685_v10, 0.0  ;;  %v677_v16 = vadd.f32 %v676_v12, %v450_v57  ;;  %v626_v57 = vadd.f32 %v1507_v50, %v385_v47  ;;  %v733_v50 = vpop.permute.xlu0 %732 }
 0x138   : > { %v701_v20 = vmax.f32 %v677_v16, 0.0  ;;  %v715_v21 = vpack.c.bf16 %v703_v15, %v702_v14  ;;  %v688_v58 = vmax.f32 %v626_v57, 0.0 }
 0x13a   : > { %v714_v24 = vpack.c.bf16 %v701_v20, %v700_v19  ;;  %1102 = vmatprep.subr.bf16.mxu1 %v715_v21  ;;  %v708_v59 = vpack.c.bf16 %v689_v51, %v688_v58  ;;  %v723_v1 = vpop.permute.xlu0 %722 }
 0x13b   : > { %1103 = vmatpush3.bf16.msra.mxu1 %v715_v21 }
 0x13c   : > { %1104 = vmatprep.subr.bf16.mxu1 %v714_v24 }
 0x13e   : > { %v814_v15 = vpop.permute.xlu0 %813 }
 0x13f   : > { %1105 = vmatpush3.bf16.msra.mxu1 %v714_v24 }
 0x140   : > { %1106 = vmatprep.subr.bf16.mxu1 %v713_v30 }
 0x142   : > { %v879_v26 = vpop.permute.xlu0 %878 }
 0x143   : > { %1107 = vmatpush3.bf16.msra.mxu1 %v713_v30 }
 0x144   : > { %1108 = vmatprep.subr.bf16.mxu1 %v712_v37 }
 0x147   : > { %1109 = vmatpush3.bf16.msra.mxu1 %v712_v37 }
 0x148   : > { %1110 = vmatprep.subr.bf16.mxu1 %v711_v42 }
 0x14b   : > { %1111 = vmatpush3.bf16.msra.mxu1 %v711_v42 }
 0x14c   : > { %1112 = vmatprep.subr.bf16.mxu1 %v710_v54 }
 0x14f   : > { %1113 = vmatpush3.bf16.msra.mxu1 %v710_v54 }
 0x150   : > { %1114 = vmatprep.subr.bf16.mxu1 %v709_v56 }
 0x153   : > { %1115 = vmatpush3.bf16.msra.mxu1 %v709_v56 }
 0x154   : > { %1116 = vmatprep.subr.bf16.mxu1 %v708_v59 }
 0x157   : > { %1117 = vmatpush3.bf16.msra.mxu1 %v708_v59 }
 0x158   : > { %1122 = vmatprep.subr.bf16.mxu1 %v1270_v53 }
 0x15a   : > { %1119 = vmatmul.mubr.bf16.vlgmr.msra.gmra.mxu1 %v1205_v49 }
 0x15b   : > { %1126 = vmatprep.mubr.msk.bf16.mxu1 %vm1271_vm1, %v1270_v53 }
 0x21a   : > { %v1120_v61 = vpop.f32.mrf.mxu1 }
 0x21b   : > { %v795_v63 = vadd.f32 %v1120_v61, %v733_v50 }
 0x21c   : > { %v786_v62 = vpop.f32.mrf.mxu1 }
 0x21d   : > { %v803_v5 = vmax.f32 %v795_v63, 0.0  ;;  %v787_v6 = vadd.f32 %v786_v62, %v723_v1 }
 0x21e   : > { %v1121_v0 = vpop.f32.mrf.mxu1 }
 0x21f   : > { %v798_v2 = vadd.f32 %v1121_v0, %v738_v60  ;;  %v801_v11 = vmax.f32 %v787_v6, 0.0 }
 0x220   : > { %v789_v4 = vpop.f32.mrf.mxu1 }
 0x221   : > { %v804_v7 = vmax.f32 %v798_v2, 0.0  ;;  %v790_v8 = vadd.f32 %v789_v4, %v728_v3 }
 0x223   : > { %v808_v9 = vpack.c.bf16 %v804_v7, %v803_v5  ;;  %v802_v10 = vmax.f32 %v790_v8, 0.0 }
 0x225   : > { %1123 = vmatpush3.bf16.msra.mxu1 %v808_v9  ;;  %v807_v12 = vpack.c.bf16 %v802_v10, %v801_v11 }
 0x226   : > { %1124 = vmatprep.subr.bf16.mxu1 %v1270_v53 }
 0x229   : > { %1125 = vmatpush3.bf16.msra.mxu1 %v807_v12 }
 0x22a   : > { %1130 = vmatprep.subr.bf16.mxu1 %v1270_v53 }
 0x22c   : > { %1127 = vmatmul.mubr.msk.bf16.vlgmr.msra.gmra.mxu1 %vm826_vm2, %v1206_v13 }
 0x22d   : > { %1132 = vmatprep.mubr.msk.bf16.mxu1 %vm1271_vm1, %v1270_v53 }
 0x2ec   : > { %v864_v14 = vpop.f32.mrf.mxu1 }
 0x2ed   : > { %v865_v17 = vadd.f32 %v864_v14, %v814_v15 }
 0x2ee   : > { %v1128_v16 = vpop.f32.mrf.mxu1 }
 0x2ef   : > { %v871_v22 = vmax.f32 %v865_v17, 0.0 }
 0x2f0   : > { %v867_v19 = vpop.f32.mrf.mxu1 }
 0x2f1   : > { %v868_v20 = vadd.f32 %v867_v19, %v819_v18 }
 0x2f2   : > { %v1129_v21 = vpop.f32.mrf.mxu1 }
 0x2f3   : > { %v872_v23 = vmax.f32 %v868_v20, 0.0 }
 0x2f5   : > { %v874_v24 = vpack.c.bf16 %v872_v23, %v871_v22 }
 0x2f7   : > { %1131 = vmatpush3.bf16.msra.mxu1 %v874_v24 }
 0x2fa   : > { %1133 = vmatmul.mubr.msk.bf16.vlgmr.msra.gmra.mxu1 %vm881_vm3, %v873_v25 }
 0x3ba   : > { %v919_v27 = vpop.f32.mrf.mxu1 }
 0x3bb   : > { %v920_v28 = vadd.f32 %v919_v27, %v879_v26 }
 0x3bc   : > { %v1134_v29 = vpop.f32.mrf.mxu1 }
 0x3bd   : > { %925 = vst [vmem:[%s326_s16] sm:$0xf] %v920_v28 }
 0x3be   : > { %v922_v30 = vpop.f32.mrf.mxu1 }
 0x3bf   : > { %1220 = shalt.err (!%p1217_p3)
}
 0x3c0   : > { %s1221_s29 = scalar_lea.hbm %s1530_s22, 64  ;;  %s1225_s16 = scalar_lea.hbm %s1580_s9, 192 }
 0x3c1   : > { %p1222_p4 = scmp.ne.s32.totalorder %s1530_s22, %s1221_s29  ;;  %p1226_p9 = scmp.lt.s32.totalorder %s1530_s22, %s1580_s9 }
 0x3c2   : > { %p1227_p10 = scmp.lt.s32.totalorder %s1225_s16, %s1221_s29 }
 0x3c3   : > { %p1223_p7 = pnand %p1222_p4, %p1361_p5 }
 0x3c4   : > { %p1228_p11 = por %p1227_p10, %p1226_p9 }
 0x3c5   : > { %p1224_p8 = pneg %p1223_p7 }
 0x3c7   : > { %p1229_p12 = pnand %p1228_p11, %p1224_p8 }
 0x3c9   : > { %1232 = shalt.err (!%p1229_p12)
}
 0x3ca   : > { %1144 = dma.vmem_to_hbm [thread:$0]  (%p1361_p5), %s1532_s27, 64, %s1530_s22, %s927_s23   ;;  %v1135_v31 = vpop.f32.mrf.mxu1 }
 0x3cb PF: > { %p1150_p13 = scmp.ge.s32.totalorder %s1267_s12, 2  ;;  %s952_s13 = sand.u32 1, %s1255_s30  }
 0x3cc   : > { %s953_s24 = scalar_lea.sflag [#allocation3], %s952_s13 }
 0x3cd   : > { %p1147_p0 = pnand %p1150_p13, %p1365_p6 }
 0x3cf   : > { %p1148_p1 = pneg %p1147_p0 }
 0x3d1   : > { %1250 = dma.done.wait (%p1148_p1), %s953_s24, 64  }
 0x3d2   : > { %1252 = vsyncadd (%p1148_p1), %s953_s24, 4294967232  ;;  %p19_p2 = scmp.ge.s32.totalorder %s1348_s15, 5   ;;  %s1583_s30 = smov %s1259_s10 }
 0x3d3   : > { %s1584_s10 = smov %s1263_s11  ;;  %s1585_s11 = smov %s1359_s18 }
 0x3d4   : > { %s1586_s12 = smov %s1348_s15  ;;  %21 = sbr.rel (!%p19_p2) target bundleno = 3 (0x3), region = 91 }
 0x3d9   :  { %958 = vsyncpa [#allocation3], 1 }
 0x3da   :  { %960 = vsyncpa [#allocation3 + $0x1], 1 }

</bundles_post_ra>
